<compile_context>
chip_gen: v7x
topology: tpu7x:2x2x1
jax: 0.10.0
libtpu: 0.0.40
codegen_flags: <defaults>
</compile_context>

<pallas_src>
import jax
import jax.numpy as jnp
from jax import lax
from jax.experimental import pallas as pl
from jax.experimental.pallas import tpu as pltpu


def _signal2spd_kernel(x_ref, out_ref):
    # x_ref:   (Bb, C, T)      VMEM tile  (Bb batch elements per grid step)
    # out_ref: (1, C, Bb*C)    VMEM tile  (lane-dense packed covariances)
    Bb, C, T = x_ref.shape
    BC = Bb * C

    x3 = x_ref[...].astype(jnp.float32)                   # (Bb, C, T)
    xc3 = x3 - jnp.mean(x3, axis=-1, keepdims=True)       # center over time

    # trace(Xc @ Xc.T) == ||Xc||_F^2: per-batch trace straight from the
    # centered signal (VPU mul + XLU reduce), no dependence on the Gram so it
    # overlaps with the MXU matmul.  NOTE: /(T-1) intentionally omitted — it
    # cancels exactly in the trace normalization (eps*I is added after).
    tr = jnp.sum(xc3 * xc3, axis=(1, 2), keepdims=True)   # (Bb, 1, 1)
    inv_tr = pl.reciprocal(tr, approx=False)              # exact: 1e-5 tol

    # One big Gram matmul on the MXU; per-batch covariances are the diagonal
    # (C, C) blocks.  Stacking Bb signals gives ~Bb*C useful MXU rows.
    xc = xc3.reshape(BC, T)
    gram = jnp.dot(xc, xc.T, preferred_element_type=jnp.float32)  # (BC, BC)

    # Pack the Bb diagonal blocks lane-dense as (C, Bb*C) without lane-offset
    # slices or concatenation: scale rows by the per-batch 1/trace in a
    # (Bb, C, Bb*C) view (leading-dim split — layout no-op for C % 8 == 0),
    # mask each batch's own (C, C) block + its diagonal eps term with iota
    # compares (full-width VPU selects), then reduce over the leading Bb axis.
    g3 = gram.reshape(Bb, C, BC) * inv_tr                  # (Bb, C, BC)
    bi = lax.broadcasted_iota(jnp.int32, (Bb, C, BC), 0)   # batch index
    ci = lax.broadcasted_iota(jnp.int32, (Bb, C, BC), 1)   # row within block
    li = lax.broadcasted_iota(jnp.int32, (Bb, C, BC), 2)   # packed lane index
    band = (li >= bi * C) & (li < bi * C + C)              # own (C, C) block
    diag = li == bi * C + ci                               # block diagonal
    val = jnp.where(band, g3, jnp.float32(0.0)) + \
          jnp.where(diag, jnp.float32(1e-5), jnp.float32(0.0))
    out_ref[0] = jnp.sum(val, axis=0).astype(out_ref.dtype)   # (C, Bb*C)


def signal2spd(x, *, block_rows=128):
    """x: (B, C, T) or (B, C, T, 1). Returns (B, C, C) float32 SPD matrices."""
    # Squeeze only trailing size-1 dims (matches the intended (B, C, T)
    # contract without the all-axes-squeeze footgun for B == 1).
    while x.ndim > 3 and x.shape[-1] == 1:
        x = x[..., 0]
    assert x.ndim == 3, f"expected (B, C, T) after trailing squeeze, got {x.shape}"
    B, C, T = x.shape

    # Batches per grid step: fill ~block_rows MXU rows (128 is the safe
    # all-generation choice), but keep >= 2 grid steps when the batch allows
    # so both v7x TensorCores / megacore get work.
    Bb = max(1, block_rows // C)
    if B >= 2:
        Bb = min(Bb, B // 2)
    Bb = max(1, Bb)
    nb = pl.cdiv(B, Bb)
    B_pad = nb * Bb
    if B_pad != B:
        # Pad by replicating the last batch element (keeps trace > 0, no NaNs);
        # padded results are sliced off below.
        pad = jnp.broadcast_to(x[-1:], (B_pad - B, C, T))
        x = jnp.concatenate([x, pad], axis=0)

    out = pl.pallas_call(
        _signal2spd_kernel,
        out_shape=jax.ShapeDtypeStruct((nb, C, Bb * C), jnp.float32),
        grid_spec=pltpu.PrefetchScalarGridSpec(
            num_scalar_prefetch=0,
            grid=(nb,),
            in_specs=[pl.BlockSpec((Bb, C, T), lambda b: (b, 0, 0))],
            out_specs=pl.BlockSpec((1, C, Bb * C), lambda b: (b, 0, 0)),
        ),
        compiler_params=pltpu.CompilerParams(
            dimension_semantics=("parallel",),
        ),
    )(x)

    # Unpack the lane-dense slab back to (B, C, C): column group i of each
    # (C, Bb*C) slab is batch i within that block (pure layout plumbing).
    out = out.reshape(nb, C, Bb, C).transpose(0, 2, 1, 3).reshape(B_pad, C, C)
    return out[:B]


def _signal2spd_ref(x):
    """Pure-JAX reference matching the PyTorch module."""
    while x.ndim > 3 and x.shape[-1] == 1:
        x = x[..., 0]
    x = x.astype(jnp.float32)
    B, C, T = x.shape
    xc = x - jnp.mean(x, axis=-1, keepdims=True)
    cov = jnp.einsum("bct,bdt->bcd", xc, xc) / (T - 1)
    tra = jnp.trace(cov, axis1=-2, axis2=-1).reshape(B, 1, 1)
    cov = cov / tra
    return cov + 1e-5 * jnp.eye(C, dtype=jnp.float32)[None]


if __name__ == "__main__":
    key = jax.random.PRNGKey(0)
    k1, k2 = jax.random.split(key)

    # Small shape matching the module's typical input (trailing size-1 dim).
    B, C, T = 2, 16, 64
    x_small = jax.random.normal(k1, (B, C, T, 1), dtype=jnp.float32)
    out_small = jax.block_until_ready(signal2spd(x_small))
    ref_small = _signal2spd_ref(x_small)
    assert out_small.shape == (B, C, C)
    assert jnp.allclose(out_small, ref_small, atol=1e-5, rtol=1e-5), \
        "mismatch vs JAX reference (small batch)"

    # Larger batch exercises the blocked path: Bb = 8, Gram of 128 rows,
    # lane-dense (16, 128) output slab, grid of 2 parallel steps.
    B2 = 16
    x_big = jax.random.normal(k2, (B2, C, T, 1), dtype=jnp.float32)
    out_big = jax.block_until_ready(signal2spd(x_big))
    ref_big = _signal2spd_ref(x_big)
    assert out_big.shape == (B2, C, C)
    assert jnp.allclose(out_big, ref_big, atol=1e-5, rtol=1e-5), \
        "mismatch vs JAX reference (blocked batch)"

    print("KERNEL_OK")
</pallas_src>

<mosaic_0001>
module attributes {stable_mosaic.version = 11 : i64} {
  func.func @_signal2spd_kernel(%arg0: i32, %arg1: memref<1x16x64xf32, #tpu.memory_space<vmem>>, %arg2: memref<1x16x16xf32, #tpu.memory_space<vmem>>) attributes {dimension_semantics = [#tpu.dimension_semantics<parallel>], iteration_bounds = array<i64: 2>, scalar_prefetch = 0 : i64, scratch_operands = 0 : i64, tpu.core_type = #tpu.core_type<tc>, window_params = [{transform_indices = @transform_0, window_bounds = array<i64: 1, 16, 64>}, {transform_indices = @transform_1, window_bounds = array<i64: 1, 16, 16>}]} {
    %c0 = arith.constant 0 : index
    %c0_0 = arith.constant 0 : index
    %c0_1 = arith.constant 0 : index
    %0 = vector.load %arg1[%c0, %c0_0, %c0_1] : memref<1x16x64xf32, #tpu.memory_space<vmem>>, vector<1x16x64xf32>
    %cst = arith.constant dense<0.000000e+00> : vector<1x16xf32>
    %1 = vector.multi_reduction <add>, %0, %cst [2] : vector<1x16x64xf32> to vector<1x16xf32>
    %2 = vector.shape_cast %1 : vector<1x16xf32> to vector<1x16x1xf32>
    %cst_2 = arith.constant 6.400000e+01 : f32
    %3 = vector.broadcast %cst_2 : f32 to vector<1x16x1xf32>
    %4 = arith.divf %2, %3 : vector<1x16x1xf32>
    %5 = vector.broadcast %4 : vector<1x16x1xf32> to vector<1x16x64xf32>
    %6 = arith.subf %0, %5 : vector<1x16x64xf32>
    %7 = arith.mulf %6, %6 : vector<1x16x64xf32>
    %cst_3 = arith.constant dense<0.000000e+00> : vector<1xf32>
    %8 = vector.multi_reduction <add>, %7, %cst_3 [1, 2] : vector<1x16x64xf32> to vector<1xf32>
    %9 = vector.shape_cast %8 : vector<1xf32> to vector<1x1x1xf32>
    %10 = tpu.reciprocal %9 : vector<1x1x1xf32> -> vector<1x1x1xf32>
    %11 = vector.shape_cast %6 : vector<1x16x64xf32> to vector<16x64xf32>
    %12 = tpu.transpose %11, [1, 0] : vector<16x64xf32> -> vector<64x16xf32>
    %cst_4 = arith.constant dense<0.000000e+00> : vector<16x16xf32>
    %13 = tpu.matmul %11, %12, %cst_4 {dimension_numbers = #tpu.dot_dimension_numbers<[1], [0], [0], [1], [0, 0, 1, 1], [], []>} : vector<16x64xf32>, vector<64x16xf32>, vector<16x16xf32> -> vector<16x16xf32>
    %14 = vector.shape_cast %13 : vector<16x16xf32> to vector<1x16x16xf32>
    %15 = vector.broadcast %10 : vector<1x1x1xf32> to vector<1x16x16xf32>
    %16 = arith.mulf %14, %15 : vector<1x16x16xf32>
    %17 = tpu.iota {dimensions = array<i32: 0>} : vector<1x16x16xi32>
    %18 = tpu.iota {dimensions = array<i32: 1>} : vector<1x16x16xi32>
    %19 = tpu.iota {dimensions = array<i32: 2>} : vector<1x16x16xi32>
    %c16_i32 = arith.constant 16 : i32
    %20 = vector.broadcast %c16_i32 : i32 to vector<1x16x16xi32>
    %21 = arith.muli %17, %20 : vector<1x16x16xi32>
    %22 = arith.cmpi sge, %19, %21 : vector<1x16x16xi32>
    %c16_i32_5 = arith.constant 16 : i32
    %23 = vector.broadcast %c16_i32_5 : i32 to vector<1x16x16xi32>
    %24 = arith.muli %17, %23 : vector<1x16x16xi32>
    %c16_i32_6 = arith.constant 16 : i32
    %25 = vector.broadcast %c16_i32_6 : i32 to vector<1x16x16xi32>
    %26 = arith.addi %24, %25 : vector<1x16x16xi32>
    %27 = arith.cmpi slt, %19, %26 : vector<1x16x16xi32>
    %28 = arith.andi %22, %27 : vector<1x16x16xi1>
    %c16_i32_7 = arith.constant 16 : i32
    %29 = vector.broadcast %c16_i32_7 : i32 to vector<1x16x16xi32>
    %30 = arith.muli %17, %29 : vector<1x16x16xi32>
    %31 = arith.addi %30, %18 : vector<1x16x16xi32>
    %32 = arith.cmpi eq, %19, %31 : vector<1x16x16xi32>
    %cst_8 = arith.constant 0.000000e+00 : f32
    %33 = vector.broadcast %cst_8 : f32 to vector<1x16x16xf32>
    %34 = arith.select %28, %16, %33 : vector<1x16x16xi1>, vector<1x16x16xf32>
    %cst_9 = arith.constant 9.99999974E-6 : f32
    %cst_10 = arith.constant 0.000000e+00 : f32
    %35 = vector.broadcast %cst_9 : f32 to vector<1x16x16xf32>
    %36 = vector.broadcast %cst_10 : f32 to vector<1x16x16xf32>
    %37 = arith.select %32, %35, %36 : vector<1x16x16xi1>, vector<1x16x16xf32>
    %38 = arith.addf %34, %37 : vector<1x16x16xf32>
    %cst_11 = arith.constant dense<0.000000e+00> : vector<16x16xf32>
    %39 = vector.multi_reduction <add>, %38, %cst_11 [0] : vector<1x16x16xf32> to vector<16x16xf32>
    %c0_12 = arith.constant 0 : index
    %c0_13 = arith.constant 0 : index
    %c0_14 = arith.constant 0 : index
    %40 = vector.load %arg2[%c0_12, %c0_13, %c0_14] : memref<1x16x16xf32, #tpu.memory_space<vmem>>, vector<1x16x16xf32>
    %41 = vector.shape_cast %40 : vector<1x16x16xf32> to vector<16x16xf32>
    %42 = vector.shape_cast %39 : vector<16x16xf32> to vector<1x16x16xf32>
    tpu.vector_store %arg2[%c0_12, %c0_13, %c0_14], %42 {strides = array<i32>} : memref<1x16x16xf32, #tpu.memory_space<vmem>>, vector<1x16x16xf32>,
    return
  }
  func.func @transform_0(%arg0: i32) -> (i32, i32, i32) {
    %c0_i32 = arith.constant 0 : i32
    %c0_i32_0 = arith.constant 0 : i32
    %c0_i32_1 = arith.constant 0 : i32
    return %arg0, %c0_i32, %c0_i32_0 : i32, i32, i32
  }
  func.func @transform_1(%arg0: i32) -> (i32, i32, i32) {
    %c0_i32 = arith.constant 0 : i32
    %c0_i32_0 = arith.constant 0 : i32
    %c0_i32_1 = arith.constant 0 : i32
    return %arg0, %c0_i32, %c0_i32_0 : i32, i32, i32
  }
}

</mosaic_0001>

<bundles_post_ra>
// kernel: tpu_custom_call.1
= control target key start
LH: loop header
LB: loop body
LE: loop exit
PB: predicated region body
PF: predicated region fallthrough
CT: control target
= control target key end

     0   :  { %6 = vsyncpa [#allocation3], 0  ;;  %s733_s0 = inlined_call_operand.hbm [shape: f32[2,16,64], index: 0, kind: input, shape index: {}]   ;;  %s734_s1 = inlined_call_operand.hbm [shape: f32[2,16,16], index: 1, kind: output, shape index: {}]  }
   0x1   :  { %8 = vsyncpa [#allocation3 + $0x1], 0 }
   0x2   :  { %9 = vsyncpa [#allocation4], 0 }
   0x3   :  { %11 = vsyncpa [#allocation4 + $0x1], 0  ;;  %s559_s6 = smov 0   ;;  %s561_s7 = smov 0  }
   0x4   :  { %s563_s8 = smov 0   ;;  %s565_s9 = smov 0  }
   0x5 LB: > { %s580_s10 = sadd.s32 4294967295, %s540_s9   ;;  %s354_s11 = sadd.s32 4294967294, %s540_s9   ;;  %s540_s9 = sphi %s565_s9, %s747_s9   ;;  %s536_s8 = sphi %s563_s8, %s746_s8   ;;  %s532_s7 = sphi %s561_s7, %s745_s7   ;;  %s528_s6 = sphi %s559_s6, %s744_s6  }
   0x6   : > { %s584_s12 = sadd.s32 1, %s540_s9   ;;  %s24_s13 = sadd.s32 1, %s536_s8 }
   0x7   : > { %s21_s14 = ssub.s32 %s540_s9, %s584_s12  ;;  %p31_p0 = scmp.ne.s32.totalorder %s536_s8, %s532_s7 }
   0x8   : > { %p22_p1 = scmp.eq.s32.totalorder %s21_s14, 0  ;;  %p32_p2 = scmp.eq.s32.totalorder %s540_s9, 0 }
   0x9   : > { %p37_p3 = scmp.ne.s32.totalorder %s532_s7, %s528_s6  ;;  %p38_p4 = scmp.eq.s32.totalorder %s580_s10, 0 }
   0xa   : > { %s596_s15 = scalar_select %p22_p1, %s536_s8, %s24_s13  }
   0xb   : > { %p598_p5 = por %p32_p2, %p31_p0  ;;  %p602_p6 = por %p38_p4, %p37_p3 }
   0xc   : > { %p61_p7 = scmp.eq.s32.totalorder %s580_s10, 1  ;;  %p67_p8 = scmp.eq.s32.totalorder %s354_s11, 1 }
   0xd   : > { %p403_p10 = scmp.lt.s32.totalorder %s540_s9, 2  ;;  %s87_s20 = sand.u32 1, %s536_s8  }
   0xe   : > { %p609_p11 = por %p61_p7, %p31_p0  ;;  %p613_p12 = por %p67_p8, %p37_p3 }
   0xf   : > { %s372_s21 = sshll.u32 %s540_s9, 8  ;;  %s357_s22 = sshll.u32 %s87_s20, 4 }
  0x10   : > { %s738_s18 = scalar_select %p609_p11, 1, 0 }
  0x11   : > { %s739_s19 = scalar_select %p613_p12, 1, 0 }
  0x12   : > { %s622_s25 = scalar_lea.hbm %s733_s0, %s372_s21  ;;  %s91_s26 = scalar_lea.vmem [#allocation2], %s357_s22 }
  0x13   : > { %s98_s27 = sshll.u32 %s91_s26, 4  ;;  %p626_p13 = pnand %p403_p10, %p598_p5  ;;  %s630_s27 = int_to_ptr.vmem [resolvable:$true] %s98_s27 }
  0x14   : > { %s632_s29 = scalar_lea.sflag [#allocation3], %s87_s20  ;;  %s444_s30 = scalar_lea.hbm %s622_s25, 256 }
  0x15   : > { %p445_p0 = scmp.ne.s32.totalorder %s622_s25, %s444_s30  ;;  %p446_p1 = pneg %p626_p13 }
  0x16   : > { %s449_s4 = scalar_lea.hbm %s733_s0, 512  ;;  %p450_p4 = scmp.lt.u32.totalorder %s622_s25, %s733_s0 }
  0x17   : > { %p447_p2 = pnand %p446_p1, %p445_p0  ;;  %p451_p5 = scmp.lt.u32.totalorder %s449_s4, %s444_s30 }
  0x18   : > { %p453_p8 = scmp.lt.u32.totalorder %s444_s30, %s622_s25 }
  0x19   : > { %p448_p3 = pneg %p447_p2  ;;  %p452_p7 = por %p451_p5, %p450_p4 }
  0x1b   : > { %p454_p10 = por %p453_p8, %p452_p7 }
  0x1d   : > { %p455_p9 = pnand %p454_p10, %p448_p3 }
  0x1f   : > { %458 = shalt.err (!%p455_p9)
}
  0x20   : > { %s459_s13 = scalar_lea.vmem %s630_s27, 256  ;;  %s542_s14 = smov [#allocation2]  }
  0x21   : > { %p460_p0 = scmp.ne.s32.totalorder %s630_s27, %s459_s13  ;;  %s464_s16 = sshll.u32 %s542_s14, 4  ;;  %s465_s16 = int_to_ptr.vmem [resolvable:$false] %s464_s16 }
  0x22   : > { %s466_s20 = scalar_lea.vmem %s465_s16, 512  ;;  %p467_p11 = scmp.lt.s32.totalorder %s630_s27, %s465_s16 }
  0x23   : > { %p462_p2 = pnand %p460_p0, %p446_p1  ;;  %p468_p4 = scmp.lt.s32.totalorder %s466_s20, %s459_s13 }
  0x25   : > { %p463_p12 = pneg %p462_p2  ;;  %p469_p5 = por %p468_p4, %p467_p11 }
  0x27   : > { %p470_p7 = pnand %p469_p5, %p463_p12 }
  0x29   : > { %473 = shalt.err (!%p470_p7)
}
  0x2a   : > { %s543_s21 = smov 128   ;;  %s544_s22 = smov 8  }
  0x2b   : > { %398 = dma.hbm_to_vmem [thread:$0]  (!%p626_p13), %s622_s25, 256, %s630_s27, %s632_s29, %s543_s21, %s543_s21, %s544_s22  }
  0x2c   : > { %p360_p9 = scmp.ge.s32.totalorder %s540_s9, 1  ;;  %p106_p1 = scmp.lt.s32.totalorder %s540_s9, 3 }
  0x2e   : > { %p107_p3 = pnand %p360_p9, %p106_p1 }
  0x2f   : > { %s663_s23 = sand.u32 (!%p107_p3), 1, %s532_s7  }
  0x30   : > { %110 = sbr.rel (%p107_p3) target bundleno = 451 (0x1c3), region = 24  ;;  %s361_s24 = sshll.u32 (!%p107_p3), %s663_s23, 4 }
  0x31   : > { %s113_s26 = scalar_lea.sflag (!%p107_p3), [#allocation3], %s663_s23  ;;  %s116_s30 = scalar_lea.vmem (!%p107_p3), [#allocation2], %s361_s24 }
  0x37   : > { %519 = dma.done.wait (%p602_p6), %s113_s26, 256  }
  0x38   : > { %521 = vsyncadd (%p602_p6), %s113_s26, 4294967040  ;;  %vm137_vm0 = vcmask 523264   ;;  %v135_v0 = vld [vmem:[%s116_s30] sm:$0xff]  ;;  %v136_v1 = vld [vmem:[%s116_s30 + $0x8] sm:$0xff]  ;;  %v246_v23 = vlaneseq  ;;  %v545_v30 = vmov 0.0   ;;  %s373_s17 = sshll.u32 %s580_s10, 8 }
  0x39   : > { %v138_v2 = vsel %vm137_vm0, %v135_v0, 0.0  ;;  %v141_v3 = vsel %vm137_vm0, %v136_v1, 0.0  ;;  %vm386_vm1 = vmpackc.low %vm137_vm0, %vm137_vm0  ;;  %s134_s25 = scalar_lea.vmem [#allocation5], %s361_s24  ;;  %vm264_vm5 = vcmask 130048   ;;  %s687_s2 = scalar_lea.hbm %s734_s1, %s373_s17 }
  0x3a   : > { %139 = vadd.xlane.f32.xlu0 %v138_v2  ;;  %v247_v24 = vshrl.u32 %v246_v23, 7  ;;  %v250_v26 = vand.u32 127, %v246_v23  ;;  %s281_s27 = sshll.u32 %s134_s25, 4  ;;  %s268_s10 = scalar_lea.sflag [#allocation4], %s663_s23  ;;  %s689_s27 = int_to_ptr.vmem [resolvable:$true] %s281_s27 }
  0x3b   : > { %s474_s3 = scalar_lea.vmem %s689_s27, 256  ;;  %p741_p11 = scmp.ne.s32.totalorder %s738_s18, 0 }
  0x3c   : > { %v248_v25 = vadd.s32 8, %v247_v24  ;;  %vm254_vm3 = vcmp.eq.s32.totalorder %v250_v26, %v247_v24  ;;  %vm252_vm4 = vcmp.lt.s32.totalorder %v250_v26, 16  ;;  %p475_p6 = scmp.ne.s32.totalorder %s689_s27, %s474_s3  ;;  %s546_s4 = smov [#allocation5]  }
  0x3d   : > { %v258_v34 = vsel %vm254_vm3, 1e-05, %v545_v30  ;;  %s478_s5 = sshll.u32 %s546_s4, 4  ;;  %s479_s5 = int_to_ptr.vmem [resolvable:$false] %s478_s5 }
  0x3e   : > { %142 = vadd.xlane.f32.xlu0 %v141_v3  ;;  %vm255_vm2 = vcmp.eq.s32.totalorder %v250_v26, %v248_v25  ;;  %p476_p12 = pnand %p475_p6, %p741_p11  ;;  %s480_s11 = scalar_lea.vmem %s479_s5, 512 }
  0x3f   : > { %v259_v31 = vsel %vm255_vm2, 1e-05, %v545_v30  ;;  %p481_p8 = scmp.lt.s32.totalorder %s689_s27, %s479_s5  ;;  %p482_p10 = scmp.lt.s32.totalorder %s480_s11, %s474_s3 }
  0x40   : > { %p477_p13 = pneg %p476_p12 }
  0x41   : > { %p483_p0 = por %p482_p10, %p481_p8 }
  0x43   : > { %p484_p2 = pnand %p483_p0, %p477_p13 }
  0xc7   : > { %v140_v4 = vpop.xlane.xlu0 %139 }
  0xc8   : > { %v145_v5 = vmul.f32 0.015625, %v140_v4 }
  0xca   : > { %v147_v6 = vsub.f32 %v135_v0, %v145_v5 }
  0xcb   : > { %v143_v7 = vpop.xlane.xlu0 %142 }
  0xcc   : > { %v146_v8 = vmul.f32 0.015625, %v143_v7  ;;  %382 = vmatprep.mubr.msk.f32.mxu0 %vm137_vm0, %v147_v6  ;;  %v149_v10 = vmul.f32 %v147_v6, %v147_v6 }
  0xce   : > { %v148_v9 = vsub.f32 %v136_v1, %v146_v8  ;;  %v151_v13 = vsel %vm137_vm0, %v149_v10, 0.0 }
  0xd0   : > { %v385_v11 = vpack.c.bf16 %v148_v9, %v147_v6  ;;  %v150_v12 = vmul.f32 %v148_v9, %v148_v9 }
  0xd2   : > { %387 = vmatprep.subr.msk.bf16.mxu0 %vm386_vm1, %v385_v11  ;;  %v152_v14 = vsel %vm137_vm0, %v150_v12, 0.0 }
  0xd3   : > { %390 = vmatpush3.bf16.xpose.msk.msra.mxu0 %vm386_vm1, %v385_v11  ;;  %v153_v15 = vadd.f32 %v152_v14, %v151_v13 }
  0xd5   : > { %154 = vadd.xlane.f32.xlu1 %v153_v15 }
  0xda   : > { %383 = vmatmul.mubr.msk.f32.vlgmr.msra.gmra.mrb[0].mxu0 %vm137_vm0, %v148_v9 }
 0x162   : > { %v155_v16 = vpop.xlane.xlu1 %154 }
 0x163   : > { %v156_v17 = vrot.slane %v155_v16, 4 }
 0x165   : > { %v157_v18 = vadd.f32 %v156_v17, %v155_v16 }
 0x167   : > { %v158_v19 = vrot.slane %v157_v18, 2 }
 0x169   : > { %v159_v20 = vadd.f32 %v158_v19, %v157_v18 }
 0x16b   : > { %v160_v21 = vrot.slane %v159_v20, 1 }
 0x16d   : > { %v161_v22 = vadd.f32 %v160_v21, %v159_v20 }
 0x16f   : > { %442 = vrcp.f32 %v161_v22 }
 0x179   : > { %v443_v27 = vpop.eup %442 }
 0x1ad   : > { %v384_v28 = vpop.f32.mrb[0].mxu0 }
 0x1ae   : > { %v245_v29 = vmul.f32 %v443_v27, %v384_v28  ;;  %v235_v32 = vpop.f32.mrb[1].mxu0 }
 0x1af   : > { %v244_v33 = vmul.f32 %v443_v27, %v235_v32 }
 0x1b0   : > { %v257_v35 = vsel %vm252_vm4, %v245_v29, 0.0 }
 0x1b1   : > { %v261_v36 = vadd.f32 %v259_v31, %v257_v35  ;;  %v256_v37 = vsel %vm252_vm4, %v244_v33, 0.0 }
 0x1b2   : > { %v260_v38 = vadd.f32 %v258_v34, %v256_v37 }
 0x1b3   : > { %266 = vst.msk [vmem:[%s134_s25 + $0x8] sm:$0xff] %vm264_vm5, %v261_v36 }
 0x1b4   : > { %265 = vst.msk [vmem:[%s134_s25] sm:$0xff] %vm264_vm5, %v260_v38 }
 0x1b5   : > { %487 = shalt.err (!%p484_p2)
}
 0x1b6   : > { %s488_s13 = scalar_lea.hbm %s687_s2, 256  ;;  %s492_s20 = scalar_lea.hbm %s734_s1, 512 }
 0x1b7   : > { %p489_p4 = scmp.ne.s32.totalorder %s687_s2, %s488_s13  ;;  %p493_p9 = scmp.lt.u32.totalorder %s687_s2, %s734_s1 }
 0x1b8   : > { %p494_p1 = scmp.lt.u32.totalorder %s492_s20, %s488_s13  ;;  %p496_p6 = scmp.lt.u32.totalorder %s488_s13, %s687_s2 }
 0x1b9   : > { %p490_p5 = pnand %p489_p4, %p741_p11 }
 0x1ba   : > { %p495_p3 = por %p494_p1, %p493_p9 }
 0x1bb   : > { %p491_p7 = pneg %p490_p5 }
 0x1bc   : > { %p497_p12 = por %p496_p6, %p495_p3 }
 0x1be   : > { %p498_p13 = pnand %p497_p12, %p491_p7 }
 0x1c0   : > { %501 = shalt.err (!%p498_p13)
}
 0x1c1   : > { %s547_s24 = smov 128   ;;  %s548_s26 = smov 8  }
 0x1c2   : > { %393 = dma.vmem_to_hbm [thread:$0]  (%p741_p11), %s689_s27, 256, %s687_s2, %s268_s10, %s547_s24, %s547_s24, %s548_s26  }
 0x1c3 PF: > { %s296_s30 = sand.u32 1, %s528_s6   ;;  %p742_p8 = scmp.ne.s32.totalorder %s739_s19, 0 }
 0x1c4   : > { %p743_p10 = scmp.ge.s32.totalorder %s540_s9, 2  ;;  %s297_s17 = scalar_lea.sflag [#allocation4], %s296_s30 }
 0x1c6   : > { %p400_p0 = pnand %p743_p10, %p742_p8 }
 0x1c8   : > { %523 = dma.done.wait (!%p400_p0), %s297_s17, 256  }
 0x1c9   : > { %525 = vsyncadd (!%p400_p0), %s297_s17, 4294967040  ;;  %p14_p2 = scmp.ge.s32.totalorder %s584_s12, 4   ;;  %s744_s6 = smov %s532_s7 }
 0x1ca   : > { %s745_s7 = smov %s536_s8  ;;  %s746_s8 = smov %s596_s15 }
 0x1cb   : > { %s747_s9 = smov %s584_s12  ;;  %16 = sbr.rel (!%p14_p2) target bundleno = 5 (0x5), region = 69 }
 0x1d2   :  { %302 = vsyncpa [#allocation3], 1 }
 0x1d3   :  { %304 = vsyncpa [#allocation3 + $0x1], 1 }
 0x1d4   :  { %305 = vsyncpa [#allocation4], 1 }
 0x1d5   :  { %307 = vsyncpa [#allocation4 + $0x1], 1 }

</bundles_post_ra>
